<compile_context>
chip_gen: v7x
topology: tpu7x:2x2x1
jax: 0.10.0
libtpu: 0.0.40
codegen_flags: <defaults>
</compile_context>

<pallas_src>
import functools
import math

import jax
import jax.numpy as jnp
from jax import lax
from jax.experimental import pallas as pl
from jax.experimental.pallas import tpu as pltpu


# ----------------------------------------------------------------------- helpers
def _apply_nonlin(x, non_lin):
    if non_lin is None:
        return x
    if non_lin == "ReLU":
        return jnp.maximum(x, 0.0)
    if non_lin == "LeakyReLU":
        return jnp.where(x >= 0.0, x, 0.01 * x)
    if non_lin == "tanh":
        return jnp.tanh(x)
    raise ValueError(f"unknown non_lin: {non_lin}")


def _pick_tb(batch, per_batch_bytes, max_bytes=12 << 20):
    """Batch TB examples per grid step: amortize per-step overhead, keep the
    double-buffered (input + output) block comfortably inside VMEM on every
    generation, and keep >= 2 grid steps when batch > 1 so the 'parallel' batch
    axis can be sharded across v7x's two TensorCores."""
    for tb in (32, 16, 8, 4, 2, 1):
        if batch % tb != 0 or tb * per_batch_bytes > max_bytes:
            continue
        if batch == 1 or batch // tb >= 2:
            return tb
    return 1


def _compiler_params(vmem_bytes_needed):
    kwargs = dict(dimension_semantics=("parallel",))
    # v5e scoped default is 16 MiB (v6e/v7x: 32 MiB) -> raise the limit already at
    # ~12 MiB working set; cap at 40 MiB to leave headroom inside v7x's 64 MiB
    # physical VMEM (compiler-internal scratch + pipeline buffers).
    if vmem_bytes_needed > 12 * 1024 * 1024:
        kwargs["vmem_limit_bytes"] = int(min(vmem_bytes_needed + (4 << 20),
                                             40 * 1024 * 1024))
    return pltpu.CompilerParams(**kwargs)


def _linear_bn_scale_shift(x, w, gamma, beta, eps=1e-5):
    """Per-channel (scale, shift) such that BatchNorm(w @ x) == scale*(w @ x) + shift
    (BatchNorm2d(track_running_stats=False): biased batch stats over (B, spatial)),
    WITHOUT materializing y = w @ x:
        mean_y = w @ mean_x,   var_y = diag(w Cov_x w^T).
    Only the tiny (C, C) covariance of x is computed (plain JAX, f32)."""
    xf = x.astype(jnp.float32)
    n = x.shape[0] * x.shape[2]
    mean_x = jnp.mean(xf, axis=(0, 2))                         # (C,)
    xc = xf - mean_x[None, :, None]
    cov_x = jnp.einsum("bcn,bdn->cd", xc, xc) / n              # (C, C)
    w32 = w.astype(jnp.float32)
    mean_y = w32 @ mean_x                                      # (O,)
    var_y = jnp.einsum("oc,cd,od->o", w32, cov_x, w32)         # (O,)
    scale = gamma.astype(jnp.float32) * lax.rsqrt(var_y + eps)
    shift = beta.astype(jnp.float32) - mean_y * scale
    return scale, shift


# ----------------------------------------------- fused (expand+BN+act) + Pool_1_to_1
def _make_pool_kernel(tb, non_lin, mm_dtype, fuse_expand, out_transposed):
    def kernel(*refs):
        if fuse_expand:
            x_ref, we_ref, scale_ref, shift_ref, wp_ref, o_ref = refs
            we = we_ref[...].astype(mm_dtype)                  # (C, C_in)
            scale = scale_ref[0]                               # (C, 1) f32
            shift = shift_ref[0]
        else:
            x_ref, wp_ref, o_ref = refs
        wp = wp_ref[...].astype(mm_dtype)                      # (O, C)

        def body(b, carry):
            xb = x_ref[b].astype(mm_dtype)                     # (C_in, N)
            if fuse_expand:
                # fused: 1x1 expansion conv + BN affine + non-linearity, all in VMEM
                y = jnp.dot(we, xb, preferred_element_type=jnp.float32)   # (C, N)
                t = _apply_nonlin(y * scale + shift, non_lin).astype(mm_dtype)
            else:
                t = xb                                         # (C, N)

            # softmax logits: s[o, n] = sum_c wp[o, c] * t[c, n]
            s = jnp.dot(wp, t, preferred_element_type=jnp.float32)        # (O, N)
            s = s - jnp.max(s, axis=-1, keepdims=True)
            p = jnp.exp(s)                                                # (O, N)
            inv = 1.0 / jnp.sum(p, axis=-1, keepdims=True)     # exact: tiny (O, 1)

            if out_transposed:
                # out_t[o, c] = sum_n p[o, n] * t[c, n]  (no explicit transpose);
                # normalization deferred to the small (O, C) result.
                acc = lax.dot_general(p.astype(mm_dtype), t,
                                      dimension_numbers=(((1,), (1,)), ((), ())),
                                      preferred_element_type=jnp.float32)  # (O, C)
                o_ref[b] = (acc * inv).astype(o_ref.dtype)
            else:
                pn = (p * inv).astype(mm_dtype)
                # out[c, o] = sum_n t[c, n] * pn[o, n]
                acc = lax.dot_general(t, pn,
                                      dimension_numbers=(((1,), (1,)), ((), ())),
                                      preferred_element_type=jnp.float32)  # (C, O)
                o_ref[b] = acc.astype(o_ref.dtype)
            return carry

        if tb == 1:
            body(0, None)
        else:
            lax.fori_loop(0, tb, body, None, unroll=min(tb, 8))

    return kernel


def pool_1_to_1(x, w_pool, *, w_expand=None, scale=None, shift=None,
                non_lin=None, out_transposed=True):
    """Pool_1_to_1, optionally with the preceding expansion conv + folded BN affine
    + non-linearity fused in. x: (B, C_in, N) channels-first.
    Returns (B, O, C) if out_transposed (layout the pointwise chain consumes),
    else (B, C, O) (the module's layout). C = expanded channels, O = d."""
    B, C_in, N = x.shape
    fuse = w_expand is not None
    C = w_expand.shape[0] if fuse else C_in
    O = w_pool.shape[0]
    mm_dtype = x.dtype
    isz = jnp.dtype(x.dtype).itemsize

    tb = _pick_tb(B, C_in * N * isz + O * C * isz)
    kernel = _make_pool_kernel(tb, non_lin, mm_dtype, fuse, out_transposed)

    in_specs = [pl.BlockSpec((tb, C_in, N), lambda b: (b, 0, 0))]
    args = [x]
    if fuse:
        in_specs += [pl.BlockSpec((C, C_in), lambda b: (0, 0)),
                     pl.BlockSpec((1, C, 1), lambda b: (0, 0, 0)),
                     pl.BlockSpec((1, C, 1), lambda b: (0, 0, 0))]
        args += [w_expand.astype(mm_dtype),
                 scale.reshape(1, C, 1).astype(jnp.float32),
                 shift.reshape(1, C, 1).astype(jnp.float32)]
    in_specs.append(pl.BlockSpec((O, C), lambda b: (0, 0)))
    args.append(w_pool.astype(mm_dtype))

    out_dims = (O, C) if out_transposed else (C, O)

    mm_flops = (2 * C * C_in * N if fuse else 0) + 4 * O * C * N
    cost = pl.CostEstimate(
        flops=int(B * (mm_flops + 6 * O * N + 4 * C * N)),
        transcendentals=int(B * O * N),
        bytes_accessed=int(isz * (B * C_in * N + B * O * C)
                           + 4 * (C * C_in + O * C + 2 * C)))

    vmem_need = (2 * tb * C_in * N * isz + 2 * tb * O * C * isz
                 + (C * C_in + O * C) * isz + 8 * C + (2 << 20))

    return pl.pallas_call(
        kernel,
        out_shape=jax.ShapeDtypeStruct((B,) + out_dims, x.dtype),
        grid_spec=pltpu.PrefetchScalarGridSpec(
            num_scalar_prefetch=0,
            grid=(B // tb,),
            in_specs=in_specs,
            out_specs=pl.BlockSpec((tb,) + out_dims, lambda b: (b, 0, 0)),
        ),
        compiler_params=_compiler_params(vmem_need),
        cost_estimate=cost,
    )(*args)


# -------------------------------------- fused Pointwise_Conv_Shortcut (conv+BN+act+res)
def _make_pointwise_kernel(tb, non_lin, mm_dtype, emit_module_layout):
    def kernel(x_ref, w_ref, scale_ref, shift_ref, o_ref):
        w = w_ref[...].astype(mm_dtype)                        # (Cc, Cc)
        scale = scale_ref[0]                                   # (Cc, 1) f32
        shift = shift_ref[0]

        def body(b, carry):
            xb = x_ref[b]                                      # (Cc, M)
            y = jnp.dot(w, xb.astype(mm_dtype),
                        preferred_element_type=jnp.float32)    # (Cc, M)
            r = xb.astype(jnp.float32) + _apply_nonlin(y * scale + shift, non_lin)
            if emit_module_layout:
                # absorb the module's final transpose into the store
                o_ref[b] = r.T.astype(o_ref.dtype)             # (M, Cc)
            else:
                o_ref[b] = r.astype(o_ref.dtype)               # (Cc, M)
            return carry

        if tb == 1:
            body(0, None)
        else:
            lax.fori_loop(0, tb, body, None, unroll=min(tb, 8))

    return kernel


def pointwise_conv_shortcut(x, w, scale, shift, non_lin, *, emit_module_layout=False):
    """x + NonLin(scale * (w @ x) + shift), fused. x: (B, Cc, M) with Cc = conv
    channels (= d) and M spatial (= C_mid). If emit_module_layout, the result is
    stored transposed as (B, M, Cc) so no XLA transpose is needed afterwards."""
    B, Cc, M = x.shape
    isz = jnp.dtype(x.dtype).itemsize
    tb = _pick_tb(B, 2 * Cc * M * isz)
    kernel = _make_pointwise_kernel(tb, non_lin, x.dtype, emit_module_layout)
    out_dims = (M, Cc) if emit_module_layout else (Cc, M)
    vmem_need = 4 * tb * Cc * M * isz + Cc * Cc * isz + 8 * Cc + (2 << 20)

    return pl.pallas_call(
        kernel,
        out_shape=jax.ShapeDtypeStruct((B,) + out_dims, x.dtype),
        grid_spec=pltpu.PrefetchScalarGridSpec(
            num_scalar_prefetch=0,
            grid=(B // tb,),
            in_specs=[pl.BlockSpec((tb, Cc, M), lambda b: (b, 0, 0)),
                      pl.BlockSpec((Cc, Cc), lambda b: (0, 0)),
                      pl.BlockSpec((1, Cc, 1), lambda b: (0, 0, 0)),
                      pl.BlockSpec((1, Cc, 1), lambda b: (0, 0, 0))],
            out_specs=pl.BlockSpec((tb,) + out_dims, lambda b: (b, 0, 0)),
        ),
        compiler_params=_compiler_params(vmem_need),
        cost_estimate=pl.CostEstimate(
            flops=int(B * (2 * Cc * Cc * M + 4 * Cc * M)),
            transcendentals=0,
            bytes_accessed=int(isz * 2 * B * Cc * M + 4 * (Cc * Cc + 2 * Cc))),
    )(x, w.astype(x.dtype),
      scale.reshape(1, Cc, 1).astype(jnp.float32),
      shift.reshape(1, Cc, 1).astype(jnp.float32))


# ------------------------------------------------------------------- module forward
def block_height_reducing_filtering(x, params, *, pointwise_conv_count,
                                    second_pooling_enable, non_lin):
    """Forward of Block_Height_Reducing_Filtering. x: (B, C_in, H, 1) -> (B, C_mid, H//2, 1)."""
    assert x.shape[-1] == 1, "expects trailing spatial dim of size 1"
    x3 = x[..., 0]                                             # (B, C_in, H)

    # BN(expansion conv) folded to scale/shift straight from x's covariance; the
    # expanded activation is never written to HBM (it lives only inside pool A).
    scale_e, shift_e = _linear_bn_scale_shift(
        x3, params["w_expand"], params["gamma_expand"], params["beta_expand"])

    want_transposed = pointwise_conv_count > 0
    out = pool_1_to_1(x3, params["w_poolA"],
                      w_expand=params["w_expand"], scale=scale_e, shift=shift_e,
                      non_lin=non_lin, out_transposed=want_transposed)
    # out: (B, d, C_mid) if the pointwise chain follows, else (B, C_mid, d)

    if pointwise_conv_count > 0:
        layers = params["pointwise"]
        for li, layer in enumerate(layers):
            sc, sh = _linear_bn_scale_shift(out, layer["w"],
                                            layer["gamma"], layer["beta"])
            out = pointwise_conv_shortcut(out, layer["w"], sc, sh, non_lin,
                                          emit_module_layout=(li == len(layers) - 1))
        # out: (B, C_mid, d) — the last layer absorbed the transpose in-kernel.

    if second_pooling_enable:
        out = pool_1_to_1(out, params["w_poolB"], non_lin=None,
                          out_transposed=False)                # (B, C_mid, d)

    return out[..., None]                                      # (B, C_mid, d, 1)


# ------------------------------------------------------------------- JAX reference
def _reference_forward(x, params, *, pointwise_conv_count, second_pooling_enable,
                       non_lin, eps=1e-5):
    def bn(y, gamma, beta):
        m = jnp.mean(y, axis=(0, 2), keepdims=True)
        v = jnp.var(y, axis=(0, 2), keepdims=True)
        return (y - m) / jnp.sqrt(v + eps) * gamma[None, :, None] + beta[None, :, None]

    x3 = x[..., 0]
    t = _apply_nonlin(bn(jnp.einsum("oc,bcn->bon", params["w_expand"], x3),
                         params["gamma_expand"], params["beta_expand"]), non_lin)
    p = jax.nn.softmax(jnp.einsum("oc,bcn->bon", params["w_poolA"], t), axis=-1)
    out = jnp.einsum("bcn,bon->bco", t, p)                     # (B, C_mid, d)
    if pointwise_conv_count > 0:
        cur = jnp.transpose(out, (0, 2, 1))
        for layer in params["pointwise"]:
            yl = jnp.einsum("oc,bcm->bom", layer["w"], cur)
            cur = cur + _apply_nonlin(bn(yl, layer["gamma"], layer["beta"]), non_lin)
        out = jnp.transpose(cur, (0, 2, 1))
    if second_pooling_enable:
        p2 = jax.nn.softmax(jnp.einsum("oc,bcm->bom", params["w_poolB"], out), axis=-1)
        out = jnp.einsum("bcm,bom->bco", out, p2)
    return out[..., None]


if __name__ == "__main__":
    B, C_in, C_mid, H = 2, 4, 8, 16
    d = H // 2
    pointwise_conv_count = 2
    second_pooling_enable = True
    non_lin = "ReLU"

    key = jax.random.PRNGKey(0)
    ks = jax.random.split(key, 16)

    def conv_init(k, out_c, in_c):
        bound = 1.0 / math.sqrt(in_c)
        return jax.random.uniform(k, (out_c, in_c), jnp.float32, -bound, bound)

    params = {
        "w_expand": conv_init(ks[0], C_mid, C_in),
        "gamma_expand": 1.0 + 0.1 * jax.random.normal(ks[1], (C_mid,), jnp.float32),
        "beta_expand": 0.1 * jax.random.normal(ks[2], (C_mid,), jnp.float32),
        "w_poolA": conv_init(ks[3], d, C_mid),
        "pointwise": [
            {"w": conv_init(ks[4 + 3 * i], d, d),
             "gamma": 1.0 + 0.1 * jax.random.normal(ks[5 + 3 * i], (d,), jnp.float32),
             "beta": 0.1 * jax.random.normal(ks[6 + 3 * i], (d,), jnp.float32)}
            for i in range(pointwise_conv_count)
        ],
        "w_poolB": conv_init(ks[10], d, C_mid),
    }
    x = jax.random.normal(ks[11], (B, C_in, H, 1), jnp.float32)

    fwd = jax.jit(functools.partial(
        block_height_reducing_filtering,
        pointwise_conv_count=pointwise_conv_count,
        second_pooling_enable=second_pooling_enable,
        non_lin=non_lin))
    out = jax.block_until_ready(fwd(x, params))

    ref = _reference_forward(x, params,
                             pointwise_conv_count=pointwise_conv_count,
                             second_pooling_enable=second_pooling_enable,
                             non_lin=non_lin)
    assert out.shape == (B, C_mid, d, 1), out.shape
    err = float(jnp.max(jnp.abs(out.astype(jnp.float32) - ref)))
    assert err < 2e-3, err
    print("KERNEL_OK")
</pallas_src>

<mosaic_0001>
module attributes {stable_mosaic.version = 11 : i64} {
  func.func @kernel(%arg0: i32, %arg1: memref<1x8x8xf32, #tpu.memory_space<vmem>>, %arg2: memref<8x8xf32, #tpu.memory_space<vmem>>, %arg3: memref<1x8x1xf32, #tpu.memory_space<vmem>>, %arg4: memref<1x8x1xf32, #tpu.memory_space<vmem>>, %arg5: memref<1x8x8xf32, #tpu.memory_space<vmem>>) attributes {dimension_semantics = [#tpu.dimension_semantics<parallel>], iteration_bounds = array<i64: 2>, scalar_prefetch = 0 : i64, scratch_operands = 0 : i64, tpu.core_type = #tpu.core_type<tc>, window_params = [{transform_indices = @transform_0, window_bounds = array<i64: 1, 8, 8>}, {pipeline_mode = #tpu.pipeline_mode<synchronous>, transform_indices = @transform_1, window_bounds = array<i64: 8, 8>}, {pipeline_mode = #tpu.pipeline_mode<synchronous>, transform_indices = @transform_2, window_bounds = array<i64: 1, 8, 1>}, {pipeline_mode = #tpu.pipeline_mode<synchronous>, transform_indices = @transform_3, window_bounds = array<i64: 1, 8, 1>}, {transform_indices = @transform_4, window_bounds = array<i64: 1, 8, 8>}]} {
    %c0 = arith.constant 0 : index
    %c0_0 = arith.constant 0 : index
    %0 = vector.load %arg2[%c0, %c0_0] : memref<8x8xf32, #tpu.memory_space<vmem>>, vector<8x8xf32>
    %c0_1 = arith.constant 0 : index
    %c0_2 = arith.constant 0 : index
    %c0_3 = arith.constant 0 : index
    %1 = vector.load %arg3[%c0_1, %c0_2, %c0_3] : memref<1x8x1xf32, #tpu.memory_space<vmem>>, vector<1x8x1xf32>
    %2 = vector.shape_cast %1 : vector<1x8x1xf32> to vector<8x1xf32>
    %c0_4 = arith.constant 0 : index
    %c0_5 = arith.constant 0 : index
    %c0_6 = arith.constant 0 : index
    %3 = vector.load %arg4[%c0_4, %c0_5, %c0_6] : memref<1x8x1xf32, #tpu.memory_space<vmem>>, vector<1x8x1xf32>
    %4 = vector.shape_cast %3 : vector<1x8x1xf32> to vector<8x1xf32>
    %c0_7 = arith.constant 0 : index
    %c0_8 = arith.constant 0 : index
    %c0_9 = arith.constant 0 : index
    %5 = vector.load %arg1[%c0_7, %c0_8, %c0_9] : memref<1x8x8xf32, #tpu.memory_space<vmem>>, vector<1x8x8xf32>
    %6 = vector.shape_cast %5 : vector<1x8x8xf32> to vector<8x8xf32>
    %cst = arith.constant dense<0.000000e+00> : vector<8x8xf32>
    %7 = tpu.matmul %0, %6, %cst {dimension_numbers = #tpu.dot_dimension_numbers<[1], [0], [0], [1], [0, 0, 1, 1], [], []>} : vector<8x8xf32>, vector<8x8xf32>, vector<8x8xf32> -> vector<8x8xf32>
    %8 = vector.broadcast %2 : vector<8x1xf32> to vector<8x8xf32>
    %9 = arith.mulf %7, %8 : vector<8x8xf32>
    %10 = vector.broadcast %4 : vector<8x1xf32> to vector<8x8xf32>
    %11 = arith.addf %9, %10 : vector<8x8xf32>
    %cst_10 = arith.constant 0.000000e+00 : f32
    %12 = vector.broadcast %cst_10 : f32 to vector<8x8xf32>
    %13 = arith.maximumf %11, %12 : vector<8x8xf32>
    %14 = arith.addf %6, %13 : vector<8x8xf32>
    %15 = tpu.transpose %14, [1, 0] : vector<8x8xf32> -> vector<8x8xf32>
    %c0_11 = arith.constant 0 : index
    %c0_12 = arith.constant 0 : index
    %c0_13 = arith.constant 0 : index
    %16 = vector.load %arg5[%c0_11, %c0_12, %c0_13] : memref<1x8x8xf32, #tpu.memory_space<vmem>>, vector<1x8x8xf32>
    %17 = vector.shape_cast %16 : vector<1x8x8xf32> to vector<8x8xf32>
    %18 = vector.shape_cast %15 : vector<8x8xf32> to vector<1x8x8xf32>
    tpu.vector_store %arg5[%c0_11, %c0_12, %c0_13], %18 {strides = array<i32>} : memref<1x8x8xf32, #tpu.memory_space<vmem>>, vector<1x8x8xf32>,
    return
  }
  func.func @transform_0(%arg0: i32) -> (i32, i32, i32) {
    %c0_i32 = arith.constant 0 : i32
    %c0_i32_0 = arith.constant 0 : i32
    %c0_i32_1 = arith.constant 0 : i32
    return %arg0, %c0_i32, %c0_i32_0 : i32, i32, i32
  }
  func.func @transform_1(%arg0: i32) -> (i32, i32) {
    %c0_i32 = arith.constant 0 : i32
    %c0_i32_0 = arith.constant 0 : i32
    %c0_i32_1 = arith.constant 0 : i32
    return %c0_i32, %c0_i32_0 : i32, i32
  }
  func.func @transform_2(%arg0: i32) -> (i32, i32, i32) {
    %c0_i32 = arith.constant 0 : i32
    %c0_i32_0 = arith.constant 0 : i32
    %c0_i32_1 = arith.constant 0 : i32
    %c0_i32_2 = arith.constant 0 : i32
    return %c0_i32, %c0_i32_0, %c0_i32_1 : i32, i32, i32
  }
  func.func @transform_3(%arg0: i32) -> (i32, i32, i32) {
    %c0_i32 = arith.constant 0 : i32
    %c0_i32_0 = arith.constant 0 : i32
    %c0_i32_1 = arith.constant 0 : i32
    %c0_i32_2 = arith.constant 0 : i32
    return %c0_i32, %c0_i32_0, %c0_i32_1 : i32, i32, i32
  }
  func.func @transform_4(%arg0: i32) -> (i32, i32, i32) {
    %c0_i32 = arith.constant 0 : i32
    %c0_i32_0 = arith.constant 0 : i32
    %c0_i32_1 = arith.constant 0 : i32
    return %arg0, %c0_i32, %c0_i32_0 : i32, i32, i32
  }
}

module attributes {stable_mosaic.version = 11 : i64} {
  func.func @kernel(%arg0: i32, %arg1: memref<1x8x8xf32, #tpu.memory_space<vmem>>, %arg2: memref<8x8xf32, #tpu.memory_space<vmem>>, %arg3: memref<1x8x1xf32, #tpu.memory_space<vmem>>, %arg4: memref<1x8x1xf32, #tpu.memory_space<vmem>>, %arg5: memref<1x8x8xf32, #tpu.memory_space<vmem>>) attributes {dimension_semantics = [#tpu.dimension_semantics<parallel>], iteration_bounds = array<i64: 2>, scalar_prefetch = 0 : i64, scratch_operands = 0 : i64, tpu.core_type = #tpu.core_type<tc>, window_params = [{transform_indices = @transform_0, window_bounds = array<i64: 1, 8, 8>}, {pipeline_mode = #tpu.pipeline_mode<synchronous>, transform_indices = @transform_1, window_bounds = array<i64: 8, 8>}, {pipeline_mode = #tpu.pipeline_mode<synchronous>, transform_indices = @transform_2, window_bounds = array<i64: 1, 8, 1>}, {pipeline_mode = #tpu.pipeline_mode<synchronous>, transform_indices = @transform_3, window_bounds = array<i64: 1, 8, 1>}, {transform_indices = @transform_4, window_bounds = array<i64: 1, 8, 8>}]} {
    %c0 = arith.constant 0 : index
    %c0_0 = arith.constant 0 : index
    %0 = vector.load %arg2[%c0, %c0_0] : memref<8x8xf32, #tpu.memory_space<vmem>>, vector<8x8xf32>
    %c0_1 = arith.constant 0 : index
    %c0_2 = arith.constant 0 : index
    %c0_3 = arith.constant 0 : index
    %1 = vector.load %arg3[%c0_1, %c0_2, %c0_3] : memref<1x8x1xf32, #tpu.memory_space<vmem>>, vector<1x8x1xf32>
    %2 = vector.shape_cast %1 : vector<1x8x1xf32> to vector<8x1xf32>
    %c0_4 = arith.constant 0 : index
    %c0_5 = arith.constant 0 : index
    %c0_6 = arith.constant 0 : index
    %3 = vector.load %arg4[%c0_4, %c0_5, %c0_6] : memref<1x8x1xf32, #tpu.memory_space<vmem>>, vector<1x8x1xf32>
    %4 = vector.shape_cast %3 : vector<1x8x1xf32> to vector<8x1xf32>
    %c0_7 = arith.constant 0 : index
    %c0_8 = arith.constant 0 : index
    %c0_9 = arith.constant 0 : index
    %5 = vector.load %arg1[%c0_7, %c0_8, %c0_9] : memref<1x8x8xf32, #tpu.memory_space<vmem>>, vector<1x8x8xf32>
    %6 = vector.shape_cast %5 : vector<1x8x8xf32> to vector<8x8xf32>
    %cst = arith.constant dense<0.000000e+00> : vector<8x8xf32>
    %7 = tpu.matmul %0, %6, %cst {dimension_numbers = #tpu.dot_dimension_numbers<[1], [0], [0], [1], [0, 0, 1, 1], [], []>} : vector<8x8xf32>, vector<8x8xf32>, vector<8x8xf32> -> vector<8x8xf32>
    %8 = vector.broadcast %2 : vector<8x1xf32> to vector<8x8xf32>
    %9 = arith.mulf %7, %8 : vector<8x8xf32>
    %10 = vector.broadcast %4 : vector<8x1xf32> to vector<8x8xf32>
    %11 = arith.addf %9, %10 : vector<8x8xf32>
    %cst_10 = arith.constant 0.000000e+00 : f32
    %12 = vector.broadcast %cst_10 : f32 to vector<8x8xf32>
    %13 = arith.maximumf %11, %12 : vector<8x8xf32>
    %14 = arith.addf %6, %13 : vector<8x8xf32>
    %c0_11 = arith.constant 0 : index
    %c0_12 = arith.constant 0 : index
    %c0_13 = arith.constant 0 : index
    %15 = vector.load %arg5[%c0_11, %c0_12, %c0_13] : memref<1x8x8xf32, #tpu.memory_space<vmem>>, vector<1x8x8xf32>
    %16 = vector.shape_cast %15 : vector<1x8x8xf32> to vector<8x8xf32>
    %17 = vector.shape_cast %14 : vector<8x8xf32> to vector<1x8x8xf32>
    tpu.vector_store %arg5[%c0_11, %c0_12, %c0_13], %17 {strides = array<i32>} : memref<1x8x8xf32, #tpu.memory_space<vmem>>, vector<1x8x8xf32>,
    return
  }
  func.func @transform_0(%arg0: i32) -> (i32, i32, i32) {
    %c0_i32 = arith.constant 0 : i32
    %c0_i32_0 = arith.constant 0 : i32
    %c0_i32_1 = arith.constant 0 : i32
    return %arg0, %c0_i32, %c0_i32_0 : i32, i32, i32
  }
  func.func @transform_1(%arg0: i32) -> (i32, i32) {
    %c0_i32 = arith.constant 0 : i32
    %c0_i32_0 = arith.constant 0 : i32
    %c0_i32_1 = arith.constant 0 : i32
    return %c0_i32, %c0_i32_0 : i32, i32
  }
  func.func @transform_2(%arg0: i32) -> (i32, i32, i32) {
    %c0_i32 = arith.constant 0 : i32
    %c0_i32_0 = arith.constant 0 : i32
    %c0_i32_1 = arith.constant 0 : i32
    %c0_i32_2 = arith.constant 0 : i32
    return %c0_i32, %c0_i32_0, %c0_i32_1 : i32, i32, i32
  }
  func.func @transform_3(%arg0: i32) -> (i32, i32, i32) {
    %c0_i32 = arith.constant 0 : i32
    %c0_i32_0 = arith.constant 0 : i32
    %c0_i32_1 = arith.constant 0 : i32
    %c0_i32_2 = arith.constant 0 : i32
    return %c0_i32, %c0_i32_0, %c0_i32_1 : i32, i32, i32
  }
  func.func @transform_4(%arg0: i32) -> (i32, i32, i32) {
    %c0_i32 = arith.constant 0 : i32
    %c0_i32_0 = arith.constant 0 : i32
    %c0_i32_1 = arith.constant 0 : i32
    return %arg0, %c0_i32, %c0_i32_0 : i32, i32, i32
  }
}

module attributes {stable_mosaic.version = 11 : i64} {
  func.func @kernel(%arg0: i32, %arg1: memref<1x4x16xf32, #tpu.memory_space<vmem>>, %arg2: memref<8x4xf32, #tpu.memory_space<vmem>>, %arg3: memref<1x8x1xf32, #tpu.memory_space<vmem>>, %arg4: memref<1x8x1xf32, #tpu.memory_space<vmem>>, %arg5: memref<8x8xf32, #tpu.memory_space<vmem>>, %arg6: memref<1x8x8xf32, #tpu.memory_space<vmem>>) attributes {dimension_semantics = [#tpu.dimension_semantics<parallel>], iteration_bounds = array<i64: 2>, scalar_prefetch = 0 : i64, scratch_operands = 0 : i64, tpu.core_type = #tpu.core_type<tc>, window_params = [{transform_indices = @transform_0, window_bounds = array<i64: 1, 4, 16>}, {pipeline_mode = #tpu.pipeline_mode<synchronous>, transform_indices = @transform_1, window_bounds = array<i64: 8, 4>}, {pipeline_mode = #tpu.pipeline_mode<synchronous>, transform_indices = @transform_2, window_bounds = array<i64: 1, 8, 1>}, {pipeline_mode = #tpu.pipeline_mode<synchronous>, transform_indices = @transform_3, window_bounds = array<i64: 1, 8, 1>}, {pipeline_mode = #tpu.pipeline_mode<synchronous>, transform_indices = @transform_4, window_bounds = array<i64: 8, 8>}, {transform_indices = @transform_5, window_bounds = array<i64: 1, 8, 8>}]} {
    %c0 = arith.constant 0 : index
    %c0_0 = arith.constant 0 : index
    %0 = vector.load %arg2[%c0, %c0_0] : memref<8x4xf32, #tpu.memory_space<vmem>>, vector<8x4xf32>
    %c0_1 = arith.constant 0 : index
    %c0_2 = arith.constant 0 : index
    %c0_3 = arith.constant 0 : index
    %1 = vector.load %arg3[%c0_1, %c0_2, %c0_3] : memref<1x8x1xf32, #tpu.memory_space<vmem>>, vector<1x8x1xf32>
    %2 = vector.shape_cast %1 : vector<1x8x1xf32> to vector<8x1xf32>
    %c0_4 = arith.constant 0 : index
    %c0_5 = arith.constant 0 : index
    %c0_6 = arith.constant 0 : index
    %3 = vector.load %arg4[%c0_4, %c0_5, %c0_6] : memref<1x8x1xf32, #tpu.memory_space<vmem>>, vector<1x8x1xf32>
    %4 = vector.shape_cast %3 : vector<1x8x1xf32> to vector<8x1xf32>
    %c0_7 = arith.constant 0 : index
    %c0_8 = arith.constant 0 : index
    %5 = vector.load %arg5[%c0_7, %c0_8] : memref<8x8xf32, #tpu.memory_space<vmem>>, vector<8x8xf32>
    %c0_9 = arith.constant 0 : index
    %c0_10 = arith.constant 0 : index
    %c0_11 = arith.constant 0 : index
    %6 = vector.load %arg1[%c0_9, %c0_10, %c0_11] : memref<1x4x16xf32, #tpu.memory_space<vmem>>, vector<1x4x16xf32>
    %7 = vector.shape_cast %6 : vector<1x4x16xf32> to vector<4x16xf32>
    %cst = arith.constant dense<0.000000e+00> : vector<8x16xf32>
    %8 = tpu.matmul %0, %7, %cst {dimension_numbers = #tpu.dot_dimension_numbers<[1], [0], [0], [1], [0, 0, 1, 1], [], []>} : vector<8x4xf32>, vector<4x16xf32>, vector<8x16xf32> -> vector<8x16xf32>
    %9 = vector.broadcast %2 : vector<8x1xf32> to vector<8x16xf32>
    %10 = arith.mulf %8, %9 : vector<8x16xf32>
    %11 = vector.broadcast %4 : vector<8x1xf32> to vector<8x16xf32>
    %12 = arith.addf %10, %11 : vector<8x16xf32>
    %cst_12 = arith.constant 0.000000e+00 : f32
    %13 = vector.broadcast %cst_12 : f32 to vector<8x16xf32>
    %14 = arith.maximumf %12, %13 : vector<8x16xf32>
    %cst_13 = arith.constant dense<0.000000e+00> : vector<8x16xf32>
    %15 = tpu.matmul %5, %14, %cst_13 {dimension_numbers = #tpu.dot_dimension_numbers<[1], [0], [0], [1], [0, 0, 1, 1], [], []>} : vector<8x8xf32>, vector<8x16xf32>, vector<8x16xf32> -> vector<8x16xf32>
    %cst_14 = arith.constant dense<0xFF800000> : vector<8xf32>
    %16 = vector.multi_reduction <maximumf>, %15, %cst_14 [1] : vector<8x16xf32> to vector<8xf32>
    %17 = vector.shape_cast %16 : vector<8xf32> to vector<8x1xf32>
    %18 = vector.broadcast %17 : vector<8x1xf32> to vector<8x16xf32>
    %19 = arith.subf %15, %18 : vector<8x16xf32>
    %20 = math.exp %19 : vector<8x16xf32>
    %cst_15 = arith.constant dense<0.000000e+00> : vector<8xf32>
    %21 = vector.multi_reduction <add>, %20, %cst_15 [1] : vector<8x16xf32> to vector<8xf32>
    %22 = vector.shape_cast %21 : vector<8xf32> to vector<8x1xf32>
    %cst_16 = arith.constant 1.000000e+00 : f32
    %23 = vector.broadcast %cst_16 : f32 to vector<8x1xf32>
    %24 = arith.divf %23, %22 : vector<8x1xf32>
    %cst_17 = arith.constant dense<0.000000e+00> : vector<8x8xf32>
    %25 = tpu.matmul %20, %14, %cst_17 {dimension_numbers = #tpu.dot_dimension_numbers<[1], [1], [0], [0], [0, 0, 1, 0], [], []>} : vector<8x16xf32>, vector<8x16xf32>, vector<8x8xf32> -> vector<8x8xf32>
    %26 = vector.broadcast %24 : vector<8x1xf32> to vector<8x8xf32>
    %27 = arith.mulf %25, %26 : vector<8x8xf32>
    %c0_18 = arith.constant 0 : index
    %c0_19 = arith.constant 0 : index
    %c0_20 = arith.constant 0 : index
    %28 = vector.load %arg6[%c0_18, %c0_19, %c0_20] : memref<1x8x8xf32, #tpu.memory_space<vmem>>, vector<1x8x8xf32>
    %29 = vector.shape_cast %28 : vector<1x8x8xf32> to vector<8x8xf32>
    %30 = vector.shape_cast %27 : vector<8x8xf32> to vector<1x8x8xf32>
    tpu.vector_store %arg6[%c0_18, %c0_19, %c0_20], %30 {strides = array<i32>} : memref<1x8x8xf32, #tpu.memory_space<vmem>>, vector<1x8x8xf32>,
    return
  }
  func.func @transform_0(%arg0: i32) -> (i32, i32, i32) {
    %c0_i32 = arith.constant 0 : i32
    %c0_i32_0 = arith.constant 0 : i32
    %c0_i32_1 = arith.constant 0 : i32
    return %arg0, %c0_i32, %c0_i32_0 : i32, i32, i32
  }
  func.func @transform_1(%arg0: i32) -> (i32, i32) {
    %c0_i32 = arith.constant 0 : i32
    %c0_i32_0 = arith.constant 0 : i32
    %c0_i32_1 = arith.constant 0 : i32
    return %c0_i32, %c0_i32_0 : i32, i32
  }
  func.func @transform_2(%arg0: i32) -> (i32, i32, i32) {
    %c0_i32 = arith.constant 0 : i32
    %c0_i32_0 = arith.constant 0 : i32
    %c0_i32_1 = arith.constant 0 : i32
    %c0_i32_2 = arith.constant 0 : i32
    return %c0_i32, %c0_i32_0, %c0_i32_1 : i32, i32, i32
  }
  func.func @transform_3(%arg0: i32) -> (i32, i32, i32) {
    %c0_i32 = arith.constant 0 : i32
    %c0_i32_0 = arith.constant 0 : i32
    %c0_i32_1 = arith.constant 0 : i32
    %c0_i32_2 = arith.constant 0 : i32
    return %c0_i32, %c0_i32_0, %c0_i32_1 : i32, i32, i32
  }
  func.func @transform_4(%arg0: i32) -> (i32, i32) {
    %c0_i32 = arith.constant 0 : i32
    %c0_i32_0 = arith.constant 0 : i32
    %c0_i32_1 = arith.constant 0 : i32
    return %c0_i32, %c0_i32_0 : i32, i32
  }
  func.func @transform_5(%arg0: i32) -> (i32, i32, i32) {
    %c0_i32 = arith.constant 0 : i32
    %c0_i32_0 = arith.constant 0 : i32
    %c0_i32_1 = arith.constant 0 : i32
    return %arg0, %c0_i32, %c0_i32_0 : i32, i32, i32
  }
}

module attributes {stable_mosaic.version = 11 : i64} {
  func.func @kernel(%arg0: i32, %arg1: memref<1x8x8xf32, #tpu.memory_space<vmem>>, %arg2: memref<8x8xf32, #tpu.memory_space<vmem>>, %arg3: memref<1x8x8xf32, #tpu.memory_space<vmem>>) attributes {dimension_semantics = [#tpu.dimension_semantics<parallel>], iteration_bounds = array<i64: 2>, scalar_prefetch = 0 : i64, scratch_operands = 0 : i64, tpu.core_type = #tpu.core_type<tc>, window_params = [{transform_indices = @transform_0, window_bounds = array<i64: 1, 8, 8>}, {pipeline_mode = #tpu.pipeline_mode<synchronous>, transform_indices = @transform_1, window_bounds = array<i64: 8, 8>}, {transform_indices = @transform_2, window_bounds = array<i64: 1, 8, 8>}]} {
    %c0 = arith.constant 0 : index
    %c0_0 = arith.constant 0 : index
    %0 = vector.load %arg2[%c0, %c0_0] : memref<8x8xf32, #tpu.memory_space<vmem>>, vector<8x8xf32>
    %c0_1 = arith.constant 0 : index
    %c0_2 = arith.constant 0 : index
    %c0_3 = arith.constant 0 : index
    %1 = vector.load %arg1[%c0_1, %c0_2, %c0_3] : memref<1x8x8xf32, #tpu.memory_space<vmem>>, vector<1x8x8xf32>
    %2 = vector.shape_cast %1 : vector<1x8x8xf32> to vector<8x8xf32>
    %cst = arith.constant dense<0.000000e+00> : vector<8x8xf32>
    %3 = tpu.matmul %0, %2, %cst {dimension_numbers = #tpu.dot_dimension_numbers<[1], [0], [0], [1], [0, 0, 1, 1], [], []>} : vector<8x8xf32>, vector<8x8xf32>, vector<8x8xf32> -> vector<8x8xf32>
    %cst_4 = arith.constant dense<0xFF800000> : vector<8xf32>
    %4 = vector.multi_reduction <maximumf>, %3, %cst_4 [1] : vector<8x8xf32> to vector<8xf32>
    %5 = vector.shape_cast %4 : vector<8xf32> to vector<8x1xf32>
    %6 = vector.broadcast %5 : vector<8x1xf32> to vector<8x8xf32>
    %7 = arith.subf %3, %6 : vector<8x8xf32>
    %8 = math.exp %7 : vector<8x8xf32>
    %cst_5 = arith.constant dense<0.000000e+00> : vector<8xf32>
    %9 = vector.multi_reduction <add>, %8, %cst_5 [1] : vector<8x8xf32> to vector<8xf32>
    %10 = vector.shape_cast %9 : vector<8xf32> to vector<8x1xf32>
    %cst_6 = arith.constant 1.000000e+00 : f32
    %11 = vector.broadcast %cst_6 : f32 to vector<8x1xf32>
    %12 = arith.divf %11, %10 : vector<8x1xf32>
    %13 = vector.broadcast %12 : vector<8x1xf32> to vector<8x8xf32>
    %14 = arith.mulf %8, %13 : vector<8x8xf32>
    %cst_7 = arith.constant dense<0.000000e+00> : vector<8x8xf32>
    %15 = tpu.matmul %2, %14, %cst_7 {dimension_numbers = #tpu.dot_dimension_numbers<[1], [1], [0], [0], [0, 0, 1, 0], [], []>} : vector<8x8xf32>, vector<8x8xf32>, vector<8x8xf32> -> vector<8x8xf32>
    %c0_8 = arith.constant 0 : index
    %c0_9 = arith.constant 0 : index
    %c0_10 = arith.constant 0 : index
    %16 = vector.load %arg3[%c0_8, %c0_9, %c0_10] : memref<1x8x8xf32, #tpu.memory_space<vmem>>, vector<1x8x8xf32>
    %17 = vector.shape_cast %16 : vector<1x8x8xf32> to vector<8x8xf32>
    %18 = vector.shape_cast %15 : vector<8x8xf32> to vector<1x8x8xf32>
    tpu.vector_store %arg3[%c0_8, %c0_9, %c0_10], %18 {strides = array<i32>} : memref<1x8x8xf32, #tpu.memory_space<vmem>>, vector<1x8x8xf32>,
    return
  }
  func.func @transform_0(%arg0: i32) -> (i32, i32, i32) {
    %c0_i32 = arith.constant 0 : i32
    %c0_i32_0 = arith.constant 0 : i32
    %c0_i32_1 = arith.constant 0 : i32
    return %arg0, %c0_i32, %c0_i32_0 : i32, i32, i32
  }
  func.func @transform_1(%arg0: i32) -> (i32, i32) {
    %c0_i32 = arith.constant 0 : i32
    %c0_i32_0 = arith.constant 0 : i32
    %c0_i32_1 = arith.constant 0 : i32
    return %c0_i32, %c0_i32_0 : i32, i32
  }
  func.func @transform_2(%arg0: i32) -> (i32, i32, i32) {
    %c0_i32 = arith.constant 0 : i32
    %c0_i32_0 = arith.constant 0 : i32
    %c0_i32_1 = arith.constant 0 : i32
    return %arg0, %c0_i32, %c0_i32_0 : i32, i32, i32
  }
}

</mosaic_0001>

<bundles_post_ra>
// kernel: block_height_reducing_filtering.5
= control target key start
LH: loop header
LB: loop body
LE: loop exit
PB: predicated region body
PF: predicated region fallthrough
CT: control target
= control target key end

     0   :  { %s404_s15 = smov 0   ;;  %s430_s0 = inlined_call_operand.vmem [shape: f32[2,8,8], index: 0, kind: input, shape index: {}]   ;;  %s431_s1 = inlined_call_operand.vmem [shape: f32[8,8], index: 1, kind: input, shape index: {}]   ;;  %s432_s2 = inlined_call_operand.vmem [shape: f32[1,8,1], index: 2, kind: input, shape index: {}]   ;;  %s433_s3 = inlined_call_operand.vmem [shape: f32[1,8,1], index: 3, kind: input, shape index: {}]   ;;  %s434_s4 = inlined_call_operand.vmem [shape: f32[2,8,8], index: 4, kind: output, shape index: {}]  }
   0x1 LB: > { %s339_s16 = sadd.s32 4294967295, %s374_s15   ;;  %p343_p0 = scmp.ge.s32.totalorder %s374_s15, 1  ;;  %s374_s15 = sphi %s404_s15, %s14_s15  }
   0x2   : > { %p161_p1 = scmp.lt.s32.totalorder %s374_s15, 3 }
   0x4   : > { %p162_p2 = pnand %p343_p0, %p161_p1 }
   0x5   : > { %p185_p3 = scmp.lt.s32.totalorder (!%p162_p2), %s339_s16, 1  ;;  %v376_v0 = vmov (!%p162_p2), 0.0   ;;  %vm377_vm0 = vmmov (!%p162_p2), 0   ;;  %v194_v1 = vld [vmem:[%s432_s2] sm:$0xff] (!%p162_p2)  ;;  %v378_v2 = vmov (!%p162_p2), 0   ;;  %vm197_vm1 = vcmask (!%p162_p2), 64512  }
   0x6   : > { %165 = sbr.rel (%p162_p2) target bundleno = 239 (0xef), region = 36  ;;  %351 = vmatprep.subr.mxu0 (!%p162_p2), %v376_v0  ;;  %353 = vmatprep.mubr.msk.f32.mxu0 (!%p162_p2), %vm377_vm0, %v376_v0  ;;  %v195_v3 = vld [vmem:[%s433_s3] sm:$0xff] (!%p162_p2) }
   0x7   : > { %367 = vset.pattern.permute.xlu0 (!%p162_p2), %v378_v2  ;;  %v193_v4 = vld [vmem:[%s431_s1] sm:$0xff] (!%p162_p2) }
   0x8   : > { %273 = vperm.xlu0 (!%p162_p2), %367, %v194_v1  }
   0xc   : > { %279 = vperm.xlu0 (!%p162_p2), %367, %v195_v3  }
   0xd   : > { %s436_s16 = smov (!%p185_p3, %s339_s16), 1 }
   0xe   : > { %s344_s19 = sshll.u32 %s436_s16, 3 }
   0xf   : > { %s188_s24 = scalar_lea.vmem %s430_s0, %s344_s19  ;;  %s192_s29 = scalar_lea.vmem %s434_s4, %s344_s19 }
  0x10   : > { %v196_v5 = vld [vmem:[%s188_s24] sm:$0xff] }
  0x11   : > { %352 = vmatpush3.msra.mxu0 %v196_v5 }
  0x12   : > { %354 = vmatmul.mubr.msk.f32.vlgmr.msra.gmra.mrb[0].mxu0 %vm197_vm1, %v193_v4 }
  0x87   : > { %v274_v6 = vpop.permute.xlu0 %273 }
  0x8b   : > { %v280_v10 = vpop.permute.xlu0 %279 }
  0xe5   : > { %v267_v7 = vpop.f32.mrb[0].mxu0 }
  0xe6   : > { %v276_v8 = vmul.f32 %v274_v6, %v267_v7  ;;  %v355_v9 = vpop.f32.mrb[1].mxu0 }
  0xe8   : > { %v282_v11 = vadd.f32 %v280_v10, %v276_v8 }
  0xea   : > { %v283_v12 = vmax.f32 %v282_v11, 0.0 }
  0xec   : > { %v284_v13 = vadd.f32 %v283_v12, %v196_v5 }
  0xee   : > { %285 = vst.msk [vmem:[%s192_s29] sm:$0xff] %vm197_vm1, %v284_v13 }
  0xef PF: > { %s14_s15 = sadd.s32 1, %s374_s15  }
  0xf0   : > { %p11_p4 = scmp.ge.s32.totalorder %s14_s15, 4  }
  0xf2   :  { %13 = sbr.rel (!%p11_p4) target bundleno = 1 (0x1), region = 66 }

// kernel: block_height_reducing_filtering.7
= control target key start
LH: loop header
LB: loop body
LE: loop exit
PB: predicated region body
PF: predicated region fallthrough
CT: control target
= control target key end

     0   :  { %7 = vsyncpa [#allocation3], 0  ;;  %s640_s0 = inlined_call_operand.vmem [shape: f32[2,8,8], index: 0, kind: input, shape index: {}]   ;;  %s641_s1 = inlined_call_operand.vmem [shape: f32[8,8], index: 1, kind: input, shape index: {}]   ;;  %s642_s2 = inlined_call_operand.hbm [shape: f32[2,8,8], index: 2, kind: output, shape index: {}]  }
   0x1   :  { %9 = vsyncpa [#allocation3 + $0x1], 0  ;;  %s531_s9 = smov 0   ;;  %s533_s10 = smov 0  }
   0x2   :  { %s535_s11 = smov 0   ;;  %s537_s12 = smov 0  }
   0x3 LB: > { %s552_s13 = sadd.s32 4294967295, %s511_s12   ;;  %s377_s14 = sadd.s32 4294967294, %s511_s12   ;;  %s511_s12 = sphi %s537_s12, %s648_s12   ;;  %s507_s11 = sphi %s535_s11, %s647_s11   ;;  %s503_s10 = sphi %s533_s10, %s646_s10   ;;  %s499_s9 = sphi %s531_s9, %s645_s9  }
   0x4   : > { %s556_s15 = sadd.s32 1, %s511_s12   ;;  %s69_s16 = sadd.s32 1, %s507_s11 }
   0x5   : > { %s66_s17 = ssub.s32 %s511_s12, %s556_s15  ;;  %p79_p0 = scmp.ne.s32.totalorder %s507_s11, %s503_s10 }
   0x6   : > { %p67_p1 = scmp.eq.s32.totalorder %s66_s17, 0  ;;  %p80_p2 = scmp.eq.s32.totalorder %s552_s13, 1 }
   0x7   : > { %p85_p3 = scmp.ne.s32.totalorder %s503_s10, %s499_s9  ;;  %p86_p4 = scmp.eq.s32.totalorder %s377_s14, 1 }
   0x8   : > { %s567_s18 = scalar_select %p67_p1, %s507_s11, %s69_s16  }
   0x9   : > { %p569_p5 = por %p80_p2, %p79_p0  ;;  %p573_p6 = por %p86_p4, %p85_p3 }
   0xa   : > { %p380_p7 = scmp.ge.s32.totalorder %s511_s12, 1  ;;  %p114_p8 = scmp.lt.s32.totalorder %s511_s12, 3 }
   0xc   : > { %p115_p9 = pnand %p380_p7, %p114_p8 }
   0xd   : > { %p135_p10 = scmp.lt.s32.totalorder (!%p115_p9), %s552_s13, 1  ;;  %v513_v0 = vmov (!%p115_p9), 0.0   ;;  %vm514_vm0 = vmmov (!%p115_p9), 0   ;;  %v139_v1 = vld [vmem:[%s641_s1] sm:$0xff] (!%p115_p9)  ;;  %vm141_vm1 = vcmask (!%p115_p9), 64512   ;;  %s132_s28 = sand.u32 (!%p115_p9), 1, %s503_s10  }
   0xe   : > { %118 = sbr.rel (%p115_p9) target bundleno = 782 (0x30e), region = 28  ;;  %394 = vmatprep.subr.mxu0 (!%p115_p9), %v513_v0  ;;  %396 = vmatprep.mubr.msk.f32.mxu0 (!%p115_p9), %vm514_vm0, %v513_v0  ;;  %s381_s29 = sshll.u32 (!%p115_p9), %s132_s28, 3 }
   0xf   : > { %399 = vmatprep.subr.mxu1 (!%p115_p9), %v513_v0  ;;  %401 = vmatprep.mubr.msk.f32.mxu1 (!%p115_p9), %vm514_vm0, %v513_v0  ;;  %s387_s30 = sshll.u32 (!%p115_p9), %s552_s13, 7  ;;  %s134_s3 = scalar_lea.vmem (!%p115_p9), [#allocation2], %s381_s29 }
  0x10   : > { %s318_s4 = sshll.u32 (!%p115_p9), %s134_s3, 4  ;;  %s597_s7 = scalar_lea.hbm (!%p115_p9), %s642_s2, %s387_s30  ;;  %s599_s4 = int_to_ptr.vmem [resolvable:$true] %s318_s4 }
  0x11   : > { %s305_s8 = scalar_lea.sflag (!%p115_p9), [#allocation3], %s132_s28  ;;  %s449_s14 = scalar_lea.vmem (!%p115_p9), %s599_s4, 128 }
  0x12   : > { %p450_p11 = scmp.ne.s32.totalorder (!%p115_p9), %s599_s4, %s449_s14 }
  0x14   : > { %p451_p12 = pnand (!%p115_p9), %p450_p11, %p569_p5 }
  0x15   : > { %s136_s21 = scalar_select %p135_p10, %s552_s13, 1 }
  0x16   : > { %p452_p13 = pneg %p451_p12  ;;  %s515_s13 = smov [#allocation2]  }
  0x17   : > { %s382_s22 = sshll.u32 %s136_s21, 3  ;;  %s453_s16 = sshll.u32 %s515_s13, 4  ;;  %s454_s16 = int_to_ptr.vmem [resolvable:$false] %s453_s16 }
  0x18   : > { %s138_s25 = scalar_lea.vmem %s640_s0, %s382_s22  ;;  %s455_s17 = scalar_lea.vmem %s454_s16, 256 }
  0x19   : > { %v140_v2 = vld [vmem:[%s138_s25] sm:$0xff]  ;;  %p456_p0 = scmp.lt.s32.totalorder %s599_s4, %s454_s16  ;;  %p457_p1 = scmp.lt.s32.totalorder %s455_s17, %s449_s14 }
  0x1a   : > { %395 = vmatpush3.msra.mxu0 %v140_v2 }
  0x1b   : > { %397 = vmatmul.mubr.msk.f32.vlgmr.msra.gmra.mrb[0].mxu0 %vm141_vm1, %v139_v1  ;;  %p458_p2 = por %p457_p1, %p456_p0 }
  0x1d   : > { %p459_p3 = pnand %p458_p2, %p452_p13 }
  0xee   : > { %v211_v3 = vpop.f32.mrb[0].mxu0 }
  0xef   : > { %v398_v4 = vpop.f32.mrb[1].mxu0  ;;  %v215_v5 = vsel %vm141_vm1, %v211_v3, -inf }
  0xf0   : > { %216 = vmax.xlane.f32.xlu0 %v215_v5 }
 0x17d   : > { %v217_v6 = vpop.xlane.xlu0 %216 }
 0x17e   : > { %v218_v7 = vsub.f32 %v211_v3, %v217_v6 }
 0x180   : > { %v219_v8 = vmul.f32 1.442695, %v218_v7 }
 0x182   : > { %445 = vpow2.f32 %v219_v8 }
 0x18c   : > { %v446_v9 = vpop.eup %445 }
 0x18d   : > { %v221_v10 = vsel %vm141_vm1, %v446_v9, 0.0 }
 0x18e   : > { %222 = vadd.xlane.f32.xlu0 %v221_v10 }
 0x21b   : > { %v223_v11 = vpop.xlane.xlu0 %222 }
 0x21c   : > { %447 = vrcp.f32 %v223_v11 }
 0x226   : > { %v448_v12 = vpop.eup %447 }
 0x227   : > { %v226_v13 = vmul.f32 %v448_v12, %v446_v9 }
 0x229   : > { %400 = vmatpush3.xpose.msk.msra.mxu1 %vm141_vm1, %v226_v13 }
 0x22c   : > { %402 = vmatmul.mubr.msk.f32.vlgmr.msra.gmra.mrb[0].mxu1 %vm141_vm1, %v140_v2 }
 0x2ff   : > { %v299_v14 = vpop.f32.mrb[0].mxu1 }
 0x300   : > { %303 = vst.msk [vmem:[%s134_s3] sm:$0xff] %vm141_vm1, %v299_v14  ;;  %v403_v15 = vpop.f32.mrb[1].mxu1 }
 0x301   : > { %462 = shalt.err (!%p459_p3)
}
 0x302   : > { %s463_s21 = scalar_lea.hbm %s597_s7, 128  ;;  %s467_s24 = scalar_lea.hbm %s642_s2, 256 }
 0x303   : > { %p464_p4 = scmp.ne.s32.totalorder %s597_s7, %s463_s21  ;;  %p468_p9 = scmp.lt.u32.totalorder %s597_s7, %s642_s2 }
 0x304   : > { %p469_p10 = scmp.lt.u32.totalorder %s467_s24, %s463_s21  ;;  %p471_p12 = scmp.lt.u32.totalorder %s463_s21, %s597_s7 }
 0x305   : > { %p465_p7 = pnand %p464_p4, %p569_p5 }
 0x306   : > { %p470_p11 = por %p469_p10, %p468_p9 }
 0x307   : > { %p466_p8 = pneg %p465_p7 }
 0x308   : > { %p472_p13 = por %p471_p12, %p470_p11 }
 0x30a   : > { %p473_p0 = pnand %p472_p13, %p466_p8 }
 0x30c   : > { %476 = shalt.err (!%p473_p0)
}
 0x30d   : > { %404 = dma.vmem_to_hbm [thread:$0]  (%p569_p5), %s599_s4, 128, %s597_s7, %s305_s8  }
 0x30e PF: > { %p410_p1 = scmp.ge.s32.totalorder %s511_s12, 2  ;;  %s330_s27 = sand.u32 1, %s499_s9  }
 0x30f   : > { %s331_s28 = scalar_lea.sflag [#allocation3], %s330_s27 }
 0x310   : > { %p407_p2 = pnand %p410_p1, %p573_p6 }
 0x312   : > { %494 = dma.done.wait (!%p407_p2), %s331_s28, 128  }
 0x313   : > { %496 = vsyncadd (!%p407_p2), %s331_s28, 4294967168  ;;  %p12_p3 = scmp.ge.s32.totalorder %s556_s15, 4   ;;  %s645_s9 = smov %s503_s10 }
 0x314   : > { %s646_s10 = smov %s507_s11  ;;  %s647_s11 = smov %s567_s18 }
 0x315   : > { %s648_s12 = smov %s556_s15  ;;  %14 = sbr.rel (!%p12_p3) target bundleno = 3 (0x3), region = 63 }
 0x31c   :  { %336 = vsyncpa [#allocation3], 1 }
 0x31d   :  { %338 = vsyncpa [#allocation3 + $0x1], 1 }

// kernel: block_height_reducing_filtering.6
= control target key start
LH: loop header
LB: loop body
LE: loop exit
PB: predicated region body
PF: predicated region fallthrough
CT: control target
= control target key end

     0   :  { %s436_s15 = smov 0   ;;  %s464_s0 = inlined_call_operand.vmem [shape: f32[2,8,8], index: 0, kind: input, shape index: {}]   ;;  %s465_s1 = inlined_call_operand.vmem [shape: f32[8,8], index: 1, kind: input, shape index: {}]   ;;  %s466_s2 = inlined_call_operand.vmem [shape: f32[1,8,1], index: 2, kind: input, shape index: {}]   ;;  %s467_s3 = inlined_call_operand.vmem [shape: f32[1,8,1], index: 3, kind: input, shape index: {}]   ;;  %s468_s4 = inlined_call_operand.vmem [shape: f32[2,8,8], index: 4, kind: output, shape index: {}]  }
   0x1 LB: > { %s371_s16 = sadd.s32 4294967295, %s406_s15   ;;  %p375_p0 = scmp.ge.s32.totalorder %s406_s15, 1  ;;  %s406_s15 = sphi %s436_s15, %s14_s15  }
   0x2   : > { %p161_p1 = scmp.lt.s32.totalorder %s406_s15, 3 }
   0x4   : > { %p162_p2 = pnand %p375_p0, %p161_p1 }
   0x5   : > { %p185_p3 = scmp.lt.s32.totalorder (!%p162_p2), %s371_s16, 1  ;;  %v408_v0 = vmov (!%p162_p2), 0.0   ;;  %vm409_vm0 = vmmov (!%p162_p2), 0   ;;  %v194_v1 = vld [vmem:[%s466_s2] sm:$0xff] (!%p162_p2)  ;;  %v410_v2 = vmov (!%p162_p2), 0   ;;  %vm197_vm1 = vcmask (!%p162_p2), 64512  }
   0x6   : > { %165 = sbr.rel (%p162_p2) target bundleno = 368 (0x170), region = 36  ;;  %383 = vmatprep.subr.mxu0 (!%p162_p2), %v408_v0  ;;  %385 = vmatprep.mubr.msk.f32.mxu0 (!%p162_p2), %vm409_vm0, %v408_v0  ;;  %v195_v3 = vld [vmem:[%s467_s3] sm:$0xff] (!%p162_p2) }
   0x7   : > { %399 = vset.pattern.permute.xlu0 (!%p162_p2), %v410_v2  ;;  %v193_v4 = vld [vmem:[%s465_s1] sm:$0xff] (!%p162_p2) }
   0x8   : > { %273 = vperm.xlu0 (!%p162_p2), %399, %v194_v1  }
   0xc   : > { %279 = vperm.xlu0 (!%p162_p2), %399, %v195_v3  }
   0xd   : > { %s470_s16 = smov (!%p185_p3, %s371_s16), 1 }
   0xe   : > { %s376_s19 = sshll.u32 %s470_s16, 3 }
   0xf   : > { %s188_s24 = scalar_lea.vmem %s464_s0, %s376_s19  ;;  %s192_s29 = scalar_lea.vmem %s468_s4, %s376_s19 }
  0x10   : > { %v196_v5 = vld [vmem:[%s188_s24] sm:$0xff] }
  0x11   : > { %384 = vmatpush3.msra.mxu0 %v196_v5 }
  0x12   : > { %386 = vmatmul.mubr.msk.f32.vlgmr.msra.gmra.mrb[0].mxu0 %vm197_vm1, %v193_v4 }
  0x87   : > { %v274_v6 = vpop.permute.xlu0 %273 }
  0x8b   : > { %v280_v10 = vpop.permute.xlu0 %279 }
  0xe5   : > { %v267_v7 = vpop.f32.mrb[0].mxu0 }
  0xe6   : > { %v276_v8 = vmul.f32 %v274_v6, %v267_v7  ;;  %v387_v9 = vpop.f32.mrb[1].mxu0 }
  0xe8   : > { %v282_v11 = vadd.f32 %v280_v10, %v276_v8 }
  0xea   : > { %v283_v12 = vmax.f32 %v282_v11, 0.0 }
  0xec   : > { %v284_v13 = vadd.f32 %v283_v12, %v196_v5 }
  0xee   : > { %285 = vxpose.xlu1.b32.start.end [1/1] (short) (narrow) %v284_v13, 8 }
 0x16e   : > { %v301_v14 = vpop.trf.xlu1 }
 0x16f   : > { %317 = vst.msk [vmem:[%s192_s29] sm:$0xff] %vm197_vm1, %v301_v14 }
 0x170 PF: > { %s14_s15 = sadd.s32 1, %s406_s15  }
 0x171   : > { %p11_p4 = scmp.ge.s32.totalorder %s14_s15, 4  }
 0x173   :  { %13 = sbr.rel (!%p11_p4) target bundleno = 1 (0x1), region = 66 }

// kernel: block_height_reducing_filtering.4
= control target key start
LH: loop header
LB: loop body
LE: loop exit
PB: predicated region body
PF: predicated region fallthrough
CT: control target
= control target key end

     0   :  { %s625_s18 = smov 0   ;;  %s667_s0 = inlined_call_operand.vmem [shape: f32[2,4,16], index: 0, kind: input, shape index: {}]   ;;  %s668_s1 = inlined_call_operand.vmem [shape: f32[8,4], index: 1, kind: input, shape index: {}]   ;;  %s669_s2 = inlined_call_operand.vmem [shape: f32[1,8,1], index: 2, kind: input, shape index: {}]   ;;  %s670_s3 = inlined_call_operand.vmem [shape: f32[1,8,1], index: 3, kind: input, shape index: {}]   ;;  %s671_s4 = inlined_call_operand.vmem [shape: f32[8,8], index: 4, kind: input, shape index: {}]   ;;  %s672_s5 = inlined_call_operand.vmem [shape: f32[2,8,8], index: 5, kind: output, shape index: {}]  }
   0x1 LB: > { %s533_s19 = sadd.s32 4294967295, %s590_s18   ;;  %p537_p0 = scmp.ge.s32.totalorder %s590_s18, 1  ;;  %s590_s18 = sphi %s625_s18, %s15_s18  }
   0x2   : > { %p186_p1 = scmp.lt.s32.totalorder %s590_s18, 3 }
   0x4   : > { %p187_p2 = pnand %p537_p0, %p186_p1 }
   0x5   : > { %p212_p3 = scmp.lt.s32.totalorder (!%p187_p2), %s533_s19, 1  ;;  %v592_v0 = vmov (!%p187_p2), 0.0   ;;  %vm593_vm0 = vmmov (!%p187_p2), 0   ;;  %v221_v1 = vld [vmem:[%s669_s2] sm:$0xff] (!%p187_p2)  ;;  %v594_v2 = vmov (!%p187_p2), 0   ;;  %vm229_vm1 = vcmask (!%p187_p2), 1043456  }
   0x6   : > { %190 = sbr.rel (%p187_p2) target bundleno = 822 (0x336), region = 40  ;;  %553 = vmatprep.subr.mxu0 (!%p187_p2), %v592_v0  ;;  %555 = vmatprep.mubr.msk.f32.mxu0 (!%p187_p2), %vm593_vm0, %v592_v0  ;;  %v222_v3 = vld [vmem:[%s670_s3] sm:$0xff] (!%p187_p2)  ;;  %vm225_vm2 = vcmask (!%p187_p2), 31744   ;;  %vm390_vm3 = vcmask (!%p187_p2), 130048   ;;  %vm316_vm4 = vcmask (!%p187_p2), 64512  }
   0x7   : > { %579 = vset.pattern.permute.xlu0 (!%p187_p2), %v594_v2  ;;  %558 = vmatprep.subr.mxu1 (!%p187_p2), %v592_v0  ;;  %v220_v4 = vld [vmem:[%s668_s1] sm:$0xff] (!%p187_p2) }
   0x8   : > { %305 = vperm.xlu0 (!%p187_p2), %579, %v221_v1   ;;  %560 = vmatprep.mubr.msk.f32.mxu1 (!%p187_p2), %vm593_vm0, %v592_v0  ;;  %v223_v13 = vld [vmem:[%s671_s4] sm:$0xff] (!%p187_p2) }
   0xc   : > { %311 = vperm.xlu0 (!%p187_p2), %579, %v222_v3  }
   0xd   : > { %s674_s19 = smov (!%p212_p3, %s533_s19), 1 }
   0xe   : > { %s538_s22 = sshll.u32 %s674_s19, 2  ;;  %s539_s7 = sshll.u32 %s674_s19, 3 }
   0xf   : > { %s215_s27 = scalar_lea.vmem %s667_s0, %s538_s22  ;;  %s219_s10 = scalar_lea.vmem %s672_s5, %s539_s7 }
  0x10   : > { %v224_v5 = vld [vmem:[%s215_s27] sm:$0xf] }
  0x11   : > { %554 = vmatpush3.msk.msra.mxu0 %vm229_vm1, %v224_v5 }
  0x12   : > { %556 = vmatmul.mubr.msk.f32.vlgmr.msra.gmra.mrb[0].mxu0 %vm225_vm2, %v220_v4  ;;  %563 = vmatprep.subr.mxu0 %v592_v0 }
  0x13   : > { %565 = vmatprep.mubr.msk.f32.mxu0 %vm593_vm0, %v592_v0 }
  0x87   : > { %v306_v6 = vpop.permute.xlu0 %305 }
  0x8b   : > { %v312_v10 = vpop.permute.xlu0 %311 }
  0xe5   : > { %v299_v7 = vpop.f32.mrb[0].mxu0 }
  0xe6   : > { %v308_v8 = vmul.f32 %v306_v6, %v299_v7  ;;  %v557_v9 = vpop.f32.mrb[1].mxu0 }
  0xe8   : > { %v314_v11 = vadd.f32 %v312_v10, %v308_v8 }
  0xea   : > { %v315_v12 = vmax.f32 %v314_v11, 0.0 }
  0xec   : > { %559 = vmatpush3.msra.mxu1 %v315_v12  ;;  %564 = vmatpush3.xpose.msk.msra.mxu0 %vm390_vm3, %v315_v12 }
  0xed   : > { %561 = vmatmul.mubr.msk.f32.vlgmr.msra.gmra.mrb[0].mxu1 %vm316_vm4, %v223_v13 }
 0x1c0   : > { %v386_v14 = vpop.f32.mrb[0].mxu1 }
 0x1c1   : > { %v562_v15 = vpop.f32.mrb[1].mxu1  ;;  %v391_v16 = vsel %vm390_vm3, %v386_v14, -inf }
 0x1c2   : > { %392 = vmax.xlane.f32.xlu1 %v391_v16 }
 0x24f   : > { %v393_v17 = vpop.xlane.xlu1 %392 }
 0x250   : > { %v394_v18 = vsub.f32 %v386_v14, %v393_v17 }
 0x252   : > { %v395_v19 = vmul.f32 1.442695, %v394_v18 }
 0x254   : > { %580 = vpow2.f32 %v395_v19 }
 0x25e   : > { %v581_v20 = vpop.eup %580 }
 0x25f   : > { %566 = vmatmul.mubr.msk.f32.vlgmr.msra.gmra.mrb[2].mxu0 %vm390_vm3, %v581_v20  ;;  %v397_v21 = vsel %vm390_vm3, %v581_v20, 0.0 }
 0x260   : > { %398 = vadd.xlane.f32.xlu1 %v397_v21 }
 0x2ed   : > { %v399_v22 = vpop.xlane.xlu1 %398 }
 0x2ee   : > { %582 = vrcp.f32 %v399_v22 }
 0x2f8   : > { %v583_v23 = vpop.eup %582 }
 0x332   : > { %v474_v24 = vpop.f32.mrb[2].mxu0 }
 0x333   : > { %v478_v25 = vmul.f32 %v583_v23, %v474_v24  ;;  %v567_v26 = vpop.f32.mrb[3].mxu0 }
 0x335   : > { %479 = vst.msk [vmem:[%s219_s10] sm:$0xff] %vm316_vm4, %v478_v25 }
 0x336 PF: > { %s15_s18 = sadd.s32 1, %s590_s18  }
 0x337   : > { %p12_p4 = scmp.ge.s32.totalorder %s15_s18, 4  }
 0x339   :  { %14 = sbr.rel (!%p12_p4) target bundleno = 1 (0x1), region = 70 }

</bundles_post_ra>
